<compile_context>
chip_gen: v6e
topology: v6e:2x2x1
jax: 0.10.0
libtpu: 0.0.40
codegen_flags: <defaults>
</compile_context>

<pallas_src>
import functools

import jax
import jax.numpy as jnp
from jax.experimental import pallas as pl
from jax.experimental.pallas import tpu as pltpu

EPS = 1e-5


def _residual_block_kernel(x_ref, w_ref, aff_ref, o_ref, *, H, W, B, C):
    """x_ref/o_ref: (B*C, H*W).  w_ref: (2, B*C, 9*B*C).  aff_ref: (4, B*C, 1)."""
    P = H * W
    BC = B * C

    x = x_ref[...]                                        # (BC, P) f32, lane-dense

    # ---- boundary masks for the 9 conv taps (built once, reused by both convs) ----
    pos = jax.lax.broadcasted_iota(jnp.int32, (1, P), 1)  # flat within-sample index
    if (W & (W - 1)) == 0:
        col = pos & (W - 1)                               # p % W, W power of two
    else:
        col = jax.lax.rem(pos, W)

    taps = []
    for ky in range(3):
        for kx in range(3):
            dy, dx = ky - 1, kx - 1
            # tap reads input pixel at flat index p + dy*W + dx  ->  roll by -(d)
            shift = (-(dy * W + dx)) % P
            m = None
            if dy == -1:
                m = pos >= W
            elif dy == 1:
                m = pos < P - W
            if dx == -1:
                mc = col != 0
                m = mc if m is None else m & mc
            elif dx == 1:
                mc = col != W - 1
                m = mc if m is None else m & mc
            taps.append((shift, m))

    def conv3x3(a, w_big):
        # a: (BC, P); w_big: (BC, 9*BC) block-diagonal over batch.  -> (BC, P) f32.
        planes = []
        for shift, m in taps:
            s = a if shift == 0 else pltpu.roll(a, shift, axis=1)
            if m is not None:
                s = jnp.where(m, s, 0.0)                  # zero "same" padding
            planes.append(s)
        stack = jnp.concatenate(planes, axis=0)           # (9*BC, P), im2col stack
        return jnp.dot(w_big, stack, preferred_element_type=jnp.float32)

    inv_p = jnp.float32(1.0 / P)

    def instance_norm(y, g, b):
        # Per-row (= per sample, per channel) stats over lanes; biased variance.
        s1 = jnp.sum(y, axis=1, keepdims=True)
        s2 = jnp.sum(y * y, axis=1, keepdims=True)
        mean = s1 * inv_p
        var = jnp.maximum(s2 * inv_p - mean * mean, 0.0)
        return (y - mean) * jax.lax.rsqrt(var + EPS) * g + b

    w1 = w_ref[0]                                         # (BC, 9*BC)
    w2 = w_ref[1]
    g1 = aff_ref[0]                                       # (BC, 1)
    b1 = aff_ref[1]
    g2 = aff_ref[2]
    b2 = aff_ref[3]

    h = conv3x3(x, w1)                                    # conv1 (no bias)
    h = instance_norm(h, g1, b1)                          # IN1
    h = jnp.maximum(h, 0.0)                               # ReLU (stays in vregs)

    y = conv3x3(h, w2)                                    # conv2 (no bias)
    y = instance_norm(y, g2, b2)                          # IN2

    o_ref[...] = x + y                                    # residual add, dense store


def _pack_weight(w, B, C):
    """PyTorch Conv2d weight (Cout, Cin, 3, 3) -> im2col block-diag (B*C, 9*B*C)."""
    wt = jnp.transpose(w.astype(jnp.float32), (2, 3, 0, 1)).reshape(9, C, C)  # (t,o,i)
    eye_b = jnp.eye(B, dtype=jnp.float32)
    # big[b, o, t, d, i] = wt[t, o, i] * (b == d)
    big = jnp.einsum("bd,toi->botdi", eye_b, wt)
    return big.reshape(B * C, 9 * B * C)


@jax.jit
def residual_block(x_nchw, w1, w2, g1, b1, g2, b2):
    """x_nchw: (B, C, H, W) f32.  w1, w2: (C, C, 3, 3) (dim_in == dim_out).
    g*/b*: (C,) InstanceNorm affine params."""
    B, C, H, W = x_nchw.shape
    P = H * W
    BC = B * C

    x = x_nchw.reshape(BC, P).astype(jnp.float32)         # free reshape, no transpose

    w_packed = jnp.stack([_pack_weight(w1, B, C), _pack_weight(w2, B, C)], axis=0)
    aff = jnp.stack(
        [jnp.tile(g1.astype(jnp.float32), B),
         jnp.tile(b1.astype(jnp.float32), B),
         jnp.tile(g2.astype(jnp.float32), B),
         jnp.tile(b2.astype(jnp.float32), B)],
        axis=0,
    ).reshape(4, BC, 1)

    kernel = functools.partial(_residual_block_kernel, H=H, W=W, B=B, C=C)

    out = pl.pallas_call(
        kernel,
        out_shape=jax.ShapeDtypeStruct((BC, P), jnp.float32),
        in_specs=[
            pl.BlockSpec((BC, P), lambda: (0, 0)),               # activations
            pl.BlockSpec((2, BC, 9 * BC), lambda: (0, 0, 0)),    # packed conv weights
            pl.BlockSpec((4, BC, 1), lambda: (0, 0, 0)),         # packed affine params
        ],
        out_specs=pl.BlockSpec((BC, P), lambda: (0, 0)),
    )(x, w_packed, aff)

    return out.reshape(B, C, H, W)


def _reference(x, w1, w2, g1, b1, g2, b2):
    """Pure-JAX reference (PyTorch ResidualBlock forward, training-mode IN)."""
    def conv(a, w):
        return jax.lax.conv_general_dilated(
            a, w, window_strides=(1, 1), padding="SAME",
            dimension_numbers=("NCHW", "OIHW", "NCHW"),
            precision=jax.lax.Precision.HIGHEST)

    def inorm(a, g, b):
        mean = a.mean(axis=(2, 3), keepdims=True)
        var = a.var(axis=(2, 3), keepdims=True)
        return (a - mean) * jax.lax.rsqrt(var + EPS) * g.reshape(1, -1, 1, 1) \
            + b.reshape(1, -1, 1, 1)

    h = jnp.maximum(inorm(conv(x, w1), g1, b1), 0.0)
    return x + inorm(conv(h, w2), g2, b2)


if __name__ == "__main__":
    B, C, H, W = 2, 4, 16, 16  # dim_in == dim_out == C (required by the residual add)

    key = jax.random.PRNGKey(0)
    kx, kw1, kw2 = jax.random.split(key, 3)

    x = jax.random.normal(kx, (B, C, H, W), dtype=jnp.float32)
    # Conv2d weights (Cout, Cin, 3, 3), bias=False.
    w1 = 0.1 * jax.random.normal(kw1, (C, C, 3, 3), dtype=jnp.float32)
    w2 = 0.1 * jax.random.normal(kw2, (C, C, 3, 3), dtype=jnp.float32)
    # InstanceNorm2d affine params (PyTorch default init: weight=1, bias=0).
    g1 = jnp.ones((C,), jnp.float32)
    b1 = jnp.zeros((C,), jnp.float32)
    g2 = jnp.ones((C,), jnp.float32)
    b2 = jnp.zeros((C,), jnp.float32)

    out = residual_block(x, w1, w2, g1, b1, g2, b2)
    jax.block_until_ready(out)
    assert out.shape == (B, C, H, W)

    ref = _reference(x, w1, w2, g1, b1, g2, b2)
    max_err = float(jnp.max(jnp.abs(out - ref)))
    assert max_err < 1e-3, f"mismatch vs reference: max abs err {max_err}"

    print("KERNEL_OK")
</pallas_src>

<mosaic_0001>
module attributes {stable_mosaic.version = 11 : i64} {
  func.func @_residual_block_kernel(%arg0: memref<8x256xf32, #tpu.memory_space<vmem>>, %arg1: memref<2x8x72xf32, #tpu.memory_space<vmem>>, %arg2: memref<4x8x1xf32, #tpu.memory_space<vmem>>, %arg3: memref<8x256xf32, #tpu.memory_space<vmem>>) attributes {dimension_semantics = [], scalar_prefetch = 0 : i64, scratch_operands = 0 : i64, tpu.core_type = #tpu.core_type<tc>} {
    %c0 = arith.constant 0 : index
    %c0_0 = arith.constant 0 : index
    %0 = vector.load %arg0[%c0, %c0_0] : memref<8x256xf32, #tpu.memory_space<vmem>>, vector<8x256xf32>
    %1 = tpu.iota {dimensions = array<i32: 1>} : vector<1x256xi32>
    %c15_i32 = arith.constant 15 : i32
    %2 = vector.broadcast %c15_i32 : i32 to vector<1x256xi32>
    %3 = arith.andi %1, %2 : vector<1x256xi32>
    %c16_i32 = arith.constant 16 : i32
    %4 = vector.broadcast %c16_i32 : i32 to vector<1x256xi32>
    %5 = arith.cmpi sge, %1, %4 : vector<1x256xi32>
    %c0_i32 = arith.constant 0 : i32
    %6 = vector.broadcast %c0_i32 : i32 to vector<1x256xi32>
    %7 = arith.cmpi ne, %3, %6 : vector<1x256xi32>
    %8 = arith.andi %5, %7 : vector<1x256xi1>
    %c16_i32_1 = arith.constant 16 : i32
    %9 = vector.broadcast %c16_i32_1 : i32 to vector<1x256xi32>
    %10 = arith.cmpi sge, %1, %9 : vector<1x256xi32>
    %c16_i32_2 = arith.constant 16 : i32
    %11 = vector.broadcast %c16_i32_2 : i32 to vector<1x256xi32>
    %12 = arith.cmpi sge, %1, %11 : vector<1x256xi32>
    %c15_i32_3 = arith.constant 15 : i32
    %13 = vector.broadcast %c15_i32_3 : i32 to vector<1x256xi32>
    %14 = arith.cmpi ne, %3, %13 : vector<1x256xi32>
    %15 = arith.andi %12, %14 : vector<1x256xi1>
    %c0_i32_4 = arith.constant 0 : i32
    %16 = vector.broadcast %c0_i32_4 : i32 to vector<1x256xi32>
    %17 = arith.cmpi ne, %3, %16 : vector<1x256xi32>
    %c15_i32_5 = arith.constant 15 : i32
    %18 = vector.broadcast %c15_i32_5 : i32 to vector<1x256xi32>
    %19 = arith.cmpi ne, %3, %18 : vector<1x256xi32>
    %c240_i32 = arith.constant 240 : i32
    %20 = vector.broadcast %c240_i32 : i32 to vector<1x256xi32>
    %21 = arith.cmpi slt, %1, %20 : vector<1x256xi32>
    %c0_i32_6 = arith.constant 0 : i32
    %22 = vector.broadcast %c0_i32_6 : i32 to vector<1x256xi32>
    %23 = arith.cmpi ne, %3, %22 : vector<1x256xi32>
    %24 = arith.andi %21, %23 : vector<1x256xi1>
    %c240_i32_7 = arith.constant 240 : i32
    %25 = vector.broadcast %c240_i32_7 : i32 to vector<1x256xi32>
    %26 = arith.cmpi slt, %1, %25 : vector<1x256xi32>
    %c240_i32_8 = arith.constant 240 : i32
    %27 = vector.broadcast %c240_i32_8 : i32 to vector<1x256xi32>
    %28 = arith.cmpi slt, %1, %27 : vector<1x256xi32>
    %c15_i32_9 = arith.constant 15 : i32
    %29 = vector.broadcast %c15_i32_9 : i32 to vector<1x256xi32>
    %30 = arith.cmpi ne, %3, %29 : vector<1x256xi32>
    %31 = arith.andi %28, %30 : vector<1x256xi1>
    %c0_10 = arith.constant 0 : index
    %c0_11 = arith.constant 0 : index
    %c0_12 = arith.constant 0 : index
    %32 = vector.load %arg1[%c0_10, %c0_11, %c0_12] : memref<2x8x72xf32, #tpu.memory_space<vmem>>, vector<1x8x72xf32>
    %33 = vector.shape_cast %32 : vector<1x8x72xf32> to vector<8x72xf32>
    %c1 = arith.constant 1 : index
    %c0_13 = arith.constant 0 : index
    %c0_14 = arith.constant 0 : index
    %34 = vector.load %arg1[%c1, %c0_13, %c0_14] : memref<2x8x72xf32, #tpu.memory_space<vmem>>, vector<1x8x72xf32>
    %35 = vector.shape_cast %34 : vector<1x8x72xf32> to vector<8x72xf32>
    %c0_15 = arith.constant 0 : index
    %c0_16 = arith.constant 0 : index
    %c0_17 = arith.constant 0 : index
    %36 = vector.load %arg2[%c0_15, %c0_16, %c0_17] : memref<4x8x1xf32, #tpu.memory_space<vmem>>, vector<1x8x1xf32>
    %37 = vector.shape_cast %36 : vector<1x8x1xf32> to vector<8x1xf32>
    %c1_18 = arith.constant 1 : index
    %c0_19 = arith.constant 0 : index
    %c0_20 = arith.constant 0 : index
    %38 = vector.load %arg2[%c1_18, %c0_19, %c0_20] : memref<4x8x1xf32, #tpu.memory_space<vmem>>, vector<1x8x1xf32>
    %39 = vector.shape_cast %38 : vector<1x8x1xf32> to vector<8x1xf32>
    %c2 = arith.constant 2 : index
    %c0_21 = arith.constant 0 : index
    %c0_22 = arith.constant 0 : index
    %40 = vector.load %arg2[%c2, %c0_21, %c0_22] : memref<4x8x1xf32, #tpu.memory_space<vmem>>, vector<1x8x1xf32>
    %41 = vector.shape_cast %40 : vector<1x8x1xf32> to vector<8x1xf32>
    %c3 = arith.constant 3 : index
    %c0_23 = arith.constant 0 : index
    %c0_24 = arith.constant 0 : index
    %42 = vector.load %arg2[%c3, %c0_23, %c0_24] : memref<4x8x1xf32, #tpu.memory_space<vmem>>, vector<1x8x1xf32>
    %43 = vector.shape_cast %42 : vector<1x8x1xf32> to vector<8x1xf32>
    %c17_i32 = arith.constant 17 : i32
    %44 = tpu.dynamic_rotate %0 by %c17_i32 dim 1 : vector<8x256xf32>, i32 -> vector<8x256xf32>
    %cst = arith.constant 0.000000e+00 : f32
    %45 = vector.shape_cast %8 : vector<1x256xi1> to vector<1x256xi1>
    %46 = vector.broadcast %45 : vector<1x256xi1> to vector<8x256xi1>
    %47 = vector.broadcast %cst : f32 to vector<8x256xf32>
    %48 = arith.select %46, %44, %47 : vector<8x256xi1>, vector<8x256xf32>
    %c16_i32_25 = arith.constant 16 : i32
    %49 = tpu.dynamic_rotate %0 by %c16_i32_25 dim 1 : vector<8x256xf32>, i32 -> vector<8x256xf32>
    %cst_26 = arith.constant 0.000000e+00 : f32
    %50 = vector.shape_cast %10 : vector<1x256xi1> to vector<1x256xi1>
    %51 = vector.broadcast %50 : vector<1x256xi1> to vector<8x256xi1>
    %52 = vector.broadcast %cst_26 : f32 to vector<8x256xf32>
    %53 = arith.select %51, %49, %52 : vector<8x256xi1>, vector<8x256xf32>
    %c15_i32_27 = arith.constant 15 : i32
    %54 = tpu.dynamic_rotate %0 by %c15_i32_27 dim 1 : vector<8x256xf32>, i32 -> vector<8x256xf32>
    %cst_28 = arith.constant 0.000000e+00 : f32
    %55 = vector.shape_cast %15 : vector<1x256xi1> to vector<1x256xi1>
    %56 = vector.broadcast %55 : vector<1x256xi1> to vector<8x256xi1>
    %57 = vector.broadcast %cst_28 : f32 to vector<8x256xf32>
    %58 = arith.select %56, %54, %57 : vector<8x256xi1>, vector<8x256xf32>
    %c1_i32 = arith.constant 1 : i32
    %59 = tpu.dynamic_rotate %0 by %c1_i32 dim 1 : vector<8x256xf32>, i32 -> vector<8x256xf32>
    %cst_29 = arith.constant 0.000000e+00 : f32
    %60 = vector.shape_cast %17 : vector<1x256xi1> to vector<1x256xi1>
    %61 = vector.broadcast %60 : vector<1x256xi1> to vector<8x256xi1>
    %62 = vector.broadcast %cst_29 : f32 to vector<8x256xf32>
    %63 = arith.select %61, %59, %62 : vector<8x256xi1>, vector<8x256xf32>
    %c255_i32 = arith.constant 255 : i32
    %64 = tpu.dynamic_rotate %0 by %c255_i32 dim 1 : vector<8x256xf32>, i32 -> vector<8x256xf32>
    %cst_30 = arith.constant 0.000000e+00 : f32
    %65 = vector.shape_cast %19 : vector<1x256xi1> to vector<1x256xi1>
    %66 = vector.broadcast %65 : vector<1x256xi1> to vector<8x256xi1>
    %67 = vector.broadcast %cst_30 : f32 to vector<8x256xf32>
    %68 = arith.select %66, %64, %67 : vector<8x256xi1>, vector<8x256xf32>
    %c241_i32 = arith.constant 241 : i32
    %69 = tpu.dynamic_rotate %0 by %c241_i32 dim 1 : vector<8x256xf32>, i32 -> vector<8x256xf32>
    %cst_31 = arith.constant 0.000000e+00 : f32
    %70 = vector.shape_cast %24 : vector<1x256xi1> to vector<1x256xi1>
    %71 = vector.broadcast %70 : vector<1x256xi1> to vector<8x256xi1>
    %72 = vector.broadcast %cst_31 : f32 to vector<8x256xf32>
    %73 = arith.select %71, %69, %72 : vector<8x256xi1>, vector<8x256xf32>
    %c240_i32_32 = arith.constant 240 : i32
    %74 = tpu.dynamic_rotate %0 by %c240_i32_32 dim 1 : vector<8x256xf32>, i32 -> vector<8x256xf32>
    %cst_33 = arith.constant 0.000000e+00 : f32
    %75 = vector.shape_cast %26 : vector<1x256xi1> to vector<1x256xi1>
    %76 = vector.broadcast %75 : vector<1x256xi1> to vector<8x256xi1>
    %77 = vector.broadcast %cst_33 : f32 to vector<8x256xf32>
    %78 = arith.select %76, %74, %77 : vector<8x256xi1>, vector<8x256xf32>
    %c239_i32 = arith.constant 239 : i32
    %79 = tpu.dynamic_rotate %0 by %c239_i32 dim 1 : vector<8x256xf32>, i32 -> vector<8x256xf32>
    %cst_34 = arith.constant 0.000000e+00 : f32
    %80 = vector.shape_cast %31 : vector<1x256xi1> to vector<1x256xi1>
    %81 = vector.broadcast %80 : vector<1x256xi1> to vector<8x256xi1>
    %82 = vector.broadcast %cst_34 : f32 to vector<8x256xf32>
    %83 = arith.select %81, %79, %82 : vector<8x256xi1>, vector<8x256xf32>
    %84 = tpu.concatenate %48, %53, %58, %63, %0, %68, %73, %78, %83 in 0 : vector<8x256xf32>, vector<8x256xf32>, vector<8x256xf32>, vector<8x256xf32>, vector<8x256xf32>, vector<8x256xf32>, vector<8x256xf32>, vector<8x256xf32>, vector<8x256xf32> -> vector<72x256xf32>
    %cst_35 = arith.constant dense<0.000000e+00> : vector<8x256xf32>
    %85 = tpu.matmul %33, %84, %cst_35 {dimension_numbers = #tpu.dot_dimension_numbers<[1], [0], [0], [1], [0, 0, 1, 1], [], []>} : vector<8x72xf32>, vector<72x256xf32>, vector<8x256xf32> -> vector<8x256xf32>
    %cst_36 = arith.constant dense<0.000000e+00> : vector<8xf32>
    %86 = vector.multi_reduction <add>, %85, %cst_36 [1] : vector<8x256xf32> to vector<8xf32>
    %87 = vector.shape_cast %86 : vector<8xf32> to vector<8x1xf32>
    %88 = arith.mulf %85, %85 : vector<8x256xf32>
    %cst_37 = arith.constant dense<0.000000e+00> : vector<8xf32>
    %89 = vector.multi_reduction <add>, %88, %cst_37 [1] : vector<8x256xf32> to vector<8xf32>
    %90 = vector.shape_cast %89 : vector<8xf32> to vector<8x1xf32>
    %cst_38 = arith.constant 3.906250e-03 : f32
    %91 = vector.broadcast %cst_38 : f32 to vector<8x1xf32>
    %92 = arith.mulf %87, %91 : vector<8x1xf32>
    %cst_39 = arith.constant 3.906250e-03 : f32
    %93 = vector.broadcast %cst_39 : f32 to vector<8x1xf32>
    %94 = arith.mulf %90, %93 : vector<8x1xf32>
    %95 = arith.mulf %92, %92 : vector<8x1xf32>
    %96 = arith.subf %94, %95 : vector<8x1xf32>
    %cst_40 = arith.constant 0.000000e+00 : f32
    %97 = vector.broadcast %cst_40 : f32 to vector<8x1xf32>
    %98 = arith.maximumf %96, %97 : vector<8x1xf32>
    %99 = vector.broadcast %92 : vector<8x1xf32> to vector<8x256xf32>
    %100 = arith.subf %85, %99 : vector<8x256xf32>
    %cst_41 = arith.constant 9.99999974E-6 : f32
    %101 = vector.broadcast %cst_41 : f32 to vector<8x1xf32>
    %102 = arith.addf %98, %101 : vector<8x1xf32>
    %103 = math.rsqrt %102 : vector<8x1xf32>
    %104 = vector.broadcast %103 : vector<8x1xf32> to vector<8x256xf32>
    %105 = arith.mulf %100, %104 : vector<8x256xf32>
    %106 = vector.broadcast %37 : vector<8x1xf32> to vector<8x256xf32>
    %107 = arith.mulf %105, %106 : vector<8x256xf32>
    %108 = vector.broadcast %39 : vector<8x1xf32> to vector<8x256xf32>
    %109 = arith.addf %107, %108 : vector<8x256xf32>
    %cst_42 = arith.constant 0.000000e+00 : f32
    %110 = vector.broadcast %cst_42 : f32 to vector<8x256xf32>
    %111 = arith.maximumf %109, %110 : vector<8x256xf32>
    %c17_i32_43 = arith.constant 17 : i32
    %112 = tpu.dynamic_rotate %111 by %c17_i32_43 dim 1 : vector<8x256xf32>, i32 -> vector<8x256xf32>
    %cst_44 = arith.constant 0.000000e+00 : f32
    %113 = vector.shape_cast %8 : vector<1x256xi1> to vector<1x256xi1>
    %114 = vector.broadcast %113 : vector<1x256xi1> to vector<8x256xi1>
    %115 = vector.broadcast %cst_44 : f32 to vector<8x256xf32>
    %116 = arith.select %114, %112, %115 : vector<8x256xi1>, vector<8x256xf32>
    %c16_i32_45 = arith.constant 16 : i32
    %117 = tpu.dynamic_rotate %111 by %c16_i32_45 dim 1 : vector<8x256xf32>, i32 -> vector<8x256xf32>
    %cst_46 = arith.constant 0.000000e+00 : f32
    %118 = vector.shape_cast %10 : vector<1x256xi1> to vector<1x256xi1>
    %119 = vector.broadcast %118 : vector<1x256xi1> to vector<8x256xi1>
    %120 = vector.broadcast %cst_46 : f32 to vector<8x256xf32>
    %121 = arith.select %119, %117, %120 : vector<8x256xi1>, vector<8x256xf32>
    %c15_i32_47 = arith.constant 15 : i32
    %122 = tpu.dynamic_rotate %111 by %c15_i32_47 dim 1 : vector<8x256xf32>, i32 -> vector<8x256xf32>
    %cst_48 = arith.constant 0.000000e+00 : f32
    %123 = vector.shape_cast %15 : vector<1x256xi1> to vector<1x256xi1>
    %124 = vector.broadcast %123 : vector<1x256xi1> to vector<8x256xi1>
    %125 = vector.broadcast %cst_48 : f32 to vector<8x256xf32>
    %126 = arith.select %124, %122, %125 : vector<8x256xi1>, vector<8x256xf32>
    %c1_i32_49 = arith.constant 1 : i32
    %127 = tpu.dynamic_rotate %111 by %c1_i32_49 dim 1 : vector<8x256xf32>, i32 -> vector<8x256xf32>
    %cst_50 = arith.constant 0.000000e+00 : f32
    %128 = vector.shape_cast %17 : vector<1x256xi1> to vector<1x256xi1>
    %129 = vector.broadcast %128 : vector<1x256xi1> to vector<8x256xi1>
    %130 = vector.broadcast %cst_50 : f32 to vector<8x256xf32>
    %131 = arith.select %129, %127, %130 : vector<8x256xi1>, vector<8x256xf32>
    %c255_i32_51 = arith.constant 255 : i32
    %132 = tpu.dynamic_rotate %111 by %c255_i32_51 dim 1 : vector<8x256xf32>, i32 -> vector<8x256xf32>
    %cst_52 = arith.constant 0.000000e+00 : f32
    %133 = vector.shape_cast %19 : vector<1x256xi1> to vector<1x256xi1>
    %134 = vector.broadcast %133 : vector<1x256xi1> to vector<8x256xi1>
    %135 = vector.broadcast %cst_52 : f32 to vector<8x256xf32>
    %136 = arith.select %134, %132, %135 : vector<8x256xi1>, vector<8x256xf32>
    %c241_i32_53 = arith.constant 241 : i32
    %137 = tpu.dynamic_rotate %111 by %c241_i32_53 dim 1 : vector<8x256xf32>, i32 -> vector<8x256xf32>
    %cst_54 = arith.constant 0.000000e+00 : f32
    %138 = vector.shape_cast %24 : vector<1x256xi1> to vector<1x256xi1>
    %139 = vector.broadcast %138 : vector<1x256xi1> to vector<8x256xi1>
    %140 = vector.broadcast %cst_54 : f32 to vector<8x256xf32>
    %141 = arith.select %139, %137, %140 : vector<8x256xi1>, vector<8x256xf32>
    %c240_i32_55 = arith.constant 240 : i32
    %142 = tpu.dynamic_rotate %111 by %c240_i32_55 dim 1 : vector<8x256xf32>, i32 -> vector<8x256xf32>
    %cst_56 = arith.constant 0.000000e+00 : f32
    %143 = vector.shape_cast %26 : vector<1x256xi1> to vector<1x256xi1>
    %144 = vector.broadcast %143 : vector<1x256xi1> to vector<8x256xi1>
    %145 = vector.broadcast %cst_56 : f32 to vector<8x256xf32>
    %146 = arith.select %144, %142, %145 : vector<8x256xi1>, vector<8x256xf32>
    %c239_i32_57 = arith.constant 239 : i32
    %147 = tpu.dynamic_rotate %111 by %c239_i32_57 dim 1 : vector<8x256xf32>, i32 -> vector<8x256xf32>
    %cst_58 = arith.constant 0.000000e+00 : f32
    %148 = vector.shape_cast %31 : vector<1x256xi1> to vector<1x256xi1>
    %149 = vector.broadcast %148 : vector<1x256xi1> to vector<8x256xi1>
    %150 = vector.broadcast %cst_58 : f32 to vector<8x256xf32>
    %151 = arith.select %149, %147, %150 : vector<8x256xi1>, vector<8x256xf32>
    %152 = tpu.concatenate %116, %121, %126, %131, %111, %136, %141, %146, %151 in 0 : vector<8x256xf32>, vector<8x256xf32>, vector<8x256xf32>, vector<8x256xf32>, vector<8x256xf32>, vector<8x256xf32>, vector<8x256xf32>, vector<8x256xf32>, vector<8x256xf32> -> vector<72x256xf32>
    %cst_59 = arith.constant dense<0.000000e+00> : vector<8x256xf32>
    %153 = tpu.matmul %35, %152, %cst_59 {dimension_numbers = #tpu.dot_dimension_numbers<[1], [0], [0], [1], [0, 0, 1, 1], [], []>} : vector<8x72xf32>, vector<72x256xf32>, vector<8x256xf32> -> vector<8x256xf32>
    %cst_60 = arith.constant dense<0.000000e+00> : vector<8xf32>
    %154 = vector.multi_reduction <add>, %153, %cst_60 [1] : vector<8x256xf32> to vector<8xf32>
    %155 = vector.shape_cast %154 : vector<8xf32> to vector<8x1xf32>
    %156 = arith.mulf %153, %153 : vector<8x256xf32>
    %cst_61 = arith.constant dense<0.000000e+00> : vector<8xf32>
    %157 = vector.multi_reduction <add>, %156, %cst_61 [1] : vector<8x256xf32> to vector<8xf32>
    %158 = vector.shape_cast %157 : vector<8xf32> to vector<8x1xf32>
    %cst_62 = arith.constant 3.906250e-03 : f32
    %159 = vector.broadcast %cst_62 : f32 to vector<8x1xf32>
    %160 = arith.mulf %155, %159 : vector<8x1xf32>
    %cst_63 = arith.constant 3.906250e-03 : f32
    %161 = vector.broadcast %cst_63 : f32 to vector<8x1xf32>
    %162 = arith.mulf %158, %161 : vector<8x1xf32>
    %163 = arith.mulf %160, %160 : vector<8x1xf32>
    %164 = arith.subf %162, %163 : vector<8x1xf32>
    %cst_64 = arith.constant 0.000000e+00 : f32
    %165 = vector.broadcast %cst_64 : f32 to vector<8x1xf32>
    %166 = arith.maximumf %164, %165 : vector<8x1xf32>
    %167 = vector.broadcast %160 : vector<8x1xf32> to vector<8x256xf32>
    %168 = arith.subf %153, %167 : vector<8x256xf32>
    %cst_65 = arith.constant 9.99999974E-6 : f32
    %169 = vector.broadcast %cst_65 : f32 to vector<8x1xf32>
    %170 = arith.addf %166, %169 : vector<8x1xf32>
    %171 = math.rsqrt %170 : vector<8x1xf32>
    %172 = vector.broadcast %171 : vector<8x1xf32> to vector<8x256xf32>
    %173 = arith.mulf %168, %172 : vector<8x256xf32>
    %174 = vector.broadcast %41 : vector<8x1xf32> to vector<8x256xf32>
    %175 = arith.mulf %173, %174 : vector<8x256xf32>
    %176 = vector.broadcast %43 : vector<8x1xf32> to vector<8x256xf32>
    %177 = arith.addf %175, %176 : vector<8x256xf32>
    %178 = arith.addf %0, %177 : vector<8x256xf32>
    %c0_66 = arith.constant 0 : index
    %c0_67 = arith.constant 0 : index
    %179 = vector.load %arg3[%c0_66, %c0_67] : memref<8x256xf32, #tpu.memory_space<vmem>>, vector<8x256xf32>
    tpu.vector_store %arg3[%c0_66, %c0_67], %178 {strides = array<i32>} : memref<8x256xf32, #tpu.memory_space<vmem>>, vector<8x256xf32>,
    return
  }
}

</mosaic_0001>

<bundles_post_ra>
// kernel: tile.23
= control target key start
LH: loop header
LB: loop body
LE: loop exit
PB: predicated region body
PF: predicated region fallthrough
CT: control target
= control target key end

     0   :  { %s22_s0 = inlined_call_operand.vmem [shape: f32[4], index: 0, kind: input, shape index: {}]   ;;  %s23_s1 = inlined_call_operand.vmem [shape: f32[2,4], index: 1, kind: output, shape index: {}]  }
   0x1   :  { %v4_v0 = vld [vmem:[%s22_s0] ss:$0 sm:$0xff] }
   0x2   :  { %5 = vst [vmem:[%s23_s1] sm:$0x3] %v4_v0 }

// kernel: tile.36
= control target key start
LH: loop header
LB: loop body
LE: loop exit
PB: predicated region body
PF: predicated region fallthrough
CT: control target
= control target key end

     0   :  { %vm8_vm0 = vcmask 31744   ;;  %vm14_vm1 = vcmask 64544   ;;  %s42_s0 = inlined_call_operand.vmem [shape: f32[2,4], index: 0, kind: input, shape index: {}]   ;;  %s43_s1 = inlined_call_operand.vmem [shape: f32[1,8], index: 1, kind: output, shape index: {}]  }
   0x1   :  { %v5_v0 = vld [vmem:[%s42_s0] sm:$0x3]  ;;  %s25_s0 = smov 4  }
   0x2   :  { %6 = vst [vmem:[#allocation1] sm:$0x3] %v5_v0 }
   0x9   :  { %v11_v1 = vld [vmem:[#allocation1 + $0x1] sm:$0x1]   ;;  %v7_v2 = vld [vmem:[#allocation1] sm:$0x1]  }
   0xa   :  { %12 = vrot.lane.b32.xlu0 %v11_v1, %s25_s0  ;;  %9 = vst.msk [vmem:[#allocation0] sm:$0x1] %vm8_vm0, %v7_v2  }
  0x7c   :  { %v13_v3 = vpop.permute.xlu0 %12  }
  0x7d   :  { %15 = vst.msk [vmem:[#allocation0] sm:$0x1] %vm14_vm1, %v13_v3  }
  0x84   :  { %v20_v4 = vld [vmem:[#allocation0] sm:$0x1] }
  0x85   :  { %23 = vst [vmem:[%s43_s1] sm:$0x1] %v20_v4 }

// kernel: residual_block.1
= control target key start
LH: loop header
LB: loop body
LE: loop exit
PB: predicated region body
PF: predicated region fallthrough
CT: control target
= control target key end

     0   :  { %s490_s14 = smov 112   ;;  %s491_s15 = smov 111   ;;  %v495_v2 = vmov 0.0   ;;  %v16_v3 = vlaneseq  ;;  %v499_v49 = vmov 0   ;;  %s793_s0 = inlined_call_operand.vmem [shape: f32[8,256], index: 0, kind: input, shape index: {}]   ;;  %s794_s1 = inlined_call_operand.vmem [shape: f32[2,8,72], index: 1, kind: input, shape index: {}]   ;;  %s795_s2 = inlined_call_operand.vmem [shape: f32[4,8,1], index: 2, kind: input, shape index: {}]   ;;  %s796_s3 = inlined_call_operand.vmem [shape: f32[8,256], index: 3, kind: output, shape index: {}]  }
   0x1   :  { %v523_v0 = vld [vmem:[%s793_s0] sm:$0xff]  ;;  %v532_v1 = vld [vmem:[%s793_s0 + $0x8] sm:$0xff]  ;;  %s492_s18 = smov 113   ;;  %s493_s19 = smov 127   ;;  %219 = vmatprep.mubr.f32.mxu0 %v495_v2  ;;  %392 = vmatprep.mubr.f32.mxu1 %v495_v2  ;;  %v442_v15 = vld [vmem:[%s795_s2 + $0x10] sm:$0xff] }
   0x2   :  { %125 = vrot.lane.b32.xlu1 %v523_v0, %s490_s14  ;;  %138 = vrot.lane.b32.xlu0 %v523_v0, %s491_s15  ;;  %s494_s0 = smov 1   ;;  %s496_s20 = smov 15   ;;  %v562_v4 = vand.u32 127, %v16_v3  ;;  %v37_v48 = vld [vmem:[%s794_s1] sm:$0xff]  ;;  %v441_v56 = vld [vmem:[%s795_s2 + $0x8] sm:$0xff] }
   0x3   :  { %s497_s21 = smov 16   ;;  %s498_s22 = smov 17   ;;  %484 = vset.pattern.permute.xlu0 %v499_v49  ;;  %485 = vset.pattern.permute.xlu1 %v499_v49  ;;  %v40_v57 = vld [vmem:[%s795_s2] sm:$0xff] }
   0x4   :  { %v565_v5 = vadd.s32 128, %v562_v4  ;;  %v19_v10 = vand.u32 15, %v562_v4  ;;  %vm142_vm2 = vcmp.lt.s32.totalorder %v562_v4, 111  ;;  %vm129_vm4 = vcmp.lt.s32.totalorder %v562_v4, 112 }
   0x5   :  { %vm116_vm7 = vcmp.lt.s32.totalorder %v562_v4, 113  ;;  %vm103_vm10 = vcmp.lt.s32.totalorder %v562_v4, 127  ;;  %vm797_vm11 = vcmp.lt.s32.totalorder %v562_v4, 1  ;;  %vm21_vm12 = vcmp.ge.s32.totalorder %v562_v4, 16 }
   0x6   :  { %127 = vrot.lane.b32.xlu1 %v532_v1, %s490_s14  ;;  %140 = vrot.lane.b32.xlu0 %v532_v1, %s491_s15  ;;  %v20_v6 = vand.u32 15, %v565_v5  ;;  %vm32_vm1 = vcmp.lt.s32.totalorder %v565_v5, 240  ;;  %vm584_vm5 = vcmp.ne.s32.totalorder %v19_v10, 15  ;;  %vm615_vm9 = vcmp.ne.s32.totalorder %v19_v10, 0 }
   0x7   :  { %vm798_vm13 = vcmp.lt.s32.totalorder %v562_v4, 15  ;;  %vm653_vm14 = vmand %vm21_vm12, %vm584_vm5  ;;  %vm799_vm15 = vcmp.lt.s32.totalorder %v562_v4, 16 }
   0x8   :  { %vm568_vm0 = vcmp.ne.s32.totalorder %v20_v6, 15  ;;  %vm588_vm6 = vcmp.ne.s32.totalorder %v20_v6, 0 }
   0x9   :  { %vm579_vm3 = vmand %vm32_vm1, %vm568_vm0 }
   0xa   :  { %114 = vrot.lane.b32.xlu1 %v532_v1, %s492_s18  ;;  %112 = vrot.lane.b32.xlu0 %v523_v0, %s492_s18  ;;  %vm607_vm8 = vmand %vm32_vm1, %vm588_vm6 }
   0xe   :  { %101 = vrot.lane.b32.xlu1 %v532_v1, %s493_s19  ;;  %99 = vrot.lane.b32.xlu0 %v523_v0, %s493_s19 }
  0x12   :  { %88 = vrot.lane.b32.xlu1 %v532_v1, %s494_s0  ;;  %86 = vrot.lane.b32.xlu0 %v523_v0, %s494_s0 }
  0x16   :  { %75 = vrot.lane.b32.xlu1 %v532_v1, %s496_s20  ;;  %73 = vrot.lane.b32.xlu0 %v523_v0, %s496_s20 }
  0x1a   :  { %62 = vrot.lane.b32.xlu1 %v532_v1, %s497_s21  ;;  %60 = vrot.lane.b32.xlu0 %v523_v0, %s497_s21 }
  0x1e   :  { %49 = vrot.lane.b32.xlu1 %v532_v1, %s498_s22  ;;  %47 = vrot.lane.b32.xlu0 %v523_v0, %s498_s22 }
  0x74   :  { %v126_v7 = vpop.permute.xlu1 %125  ;;  %v139_v8 = vpop.permute.xlu0 %138 }
  0x78   :  { %v128_v12 = vpop.permute.xlu1 %127  ;;  %v141_v13 = vpop.permute.xlu0 %140 }
  0x79   :  { %v144_v16 = vsel %vm142_vm2, %v141_v13, %v139_v8  ;;  %v143_v17 = vsel %vm142_vm2, %v139_v8, %v141_v13  ;;  %v131_v18 = vsel %vm129_vm4, %v128_v12, %v126_v7  ;;  %v130_v22 = vsel %vm129_vm4, %v126_v7, %v128_v12 }
  0x7a   :  { %444 = vmatprep.subr.msk.mxu0 %vm579_vm3, %v144_v16 }
  0x7b   :  { %445 = vmatpush1.msk.msra.mxu0 %vm584_vm5, %v143_v17 }
  0x7c   :  { %v115_v20 = vpop.permute.xlu1 %114  ;;  %446 = vmatprep.subr.msk.mxu0 %vm32_vm1, %v131_v18  ;;  %v113_v21 = vpop.permute.xlu0 %112 }
  0x7d   :  { %v117_v24 = vsel %vm116_vm7, %v113_v21, %v115_v20  ;;  %v118_v25 = vsel %vm116_vm7, %v115_v20, %v113_v21  ;;  %172 = vmatpush1.msra.mxu0 %v130_v22 }
  0x7e   :  { %447 = vmatprep.subr.msk.mxu0 %vm607_vm8, %v118_v25 }
  0x7f   :  { %448 = vmatpush1.msk.msra.mxu0 %vm615_vm9, %v117_v24 }
  0x80   :  { %v102_v26 = vpop.permute.xlu1 %101  ;;  %v100_v27 = vpop.permute.xlu0 %99 }
  0x81   :  { %v104_v28 = vsel %vm103_vm10, %v100_v27, %v102_v26  ;;  %v105_v29 = vsel %vm103_vm10, %v102_v26, %v100_v27 }
  0x82   :  { %449 = vmatprep.subr.msk.mxu0 %vm568_vm0, %v105_v29 }
  0x83   :  { %450 = vmatpush1.msk.msra.mxu0 %vm584_vm5, %v104_v28 }
  0x84   :  { %v89_v30 = vpop.permute.xlu1 %88  ;;  %177 = vmatprep.subr.mxu0 %v532_v1  ;;  %v87_v31 = vpop.permute.xlu0 %86 }
  0x85   :  { %v91_v32 = vsel %vm797_vm11, %v87_v31, %v89_v30  ;;  %v92_v33 = vsel %vm797_vm11, %v89_v30, %v87_v31  ;;  %178 = vmatpush1.msra.mxu0 %v523_v0  ;;  %vm51_vm11 = vcmp.lt.s32.totalorder %v562_v4, 17 }
  0x86   :  { %451 = vmatprep.subr.msk.mxu0 %vm588_vm6, %v91_v32 }
  0x87   :  { %452 = vmatpush1.msk.msra.mxu0 %vm615_vm9, %v92_v33 }
  0x88   :  { %v76_v34 = vpop.permute.xlu1 %75  ;;  %v74_v35 = vpop.permute.xlu0 %73 }
  0x89   :  { %v78_v37 = vsel %vm798_vm13, %v74_v35, %v76_v34  ;;  %v79_v38 = vsel %vm798_vm13, %v76_v34, %v74_v35  ;;  %vm677_vm13 = vmand %vm21_vm12, %vm615_vm9 }
  0x8a   :  { %453 = vmatprep.subr.msk.mxu0 %vm568_vm0, %v78_v37 }
  0x8b   :  { %454 = vmatpush1.msk.msra.mxu0 %vm653_vm14, %v79_v38 }
  0x8c   :  { %v63_v39 = vpop.permute.xlu1 %62  ;;  %v61_v40 = vpop.permute.xlu0 %60 }
  0x8d   :  { %v66_v41 = vsel %vm799_vm15, %v63_v39, %v61_v40  ;;  %v65_v42 = vsel %vm799_vm15, %v61_v40, %v63_v39  ;;  %vm151_vm15 = vcmask 588800  }
  0x8e   :  { %183 = vmatprep.subr.mxu0 %v65_v42 }
  0x8f   :  { %455 = vmatpush1.msk.msra.mxu0 %vm21_vm12, %v66_v41 }
  0x90   :  { %v50_v43 = vpop.permute.xlu1 %49  ;;  %v48_v44 = vpop.permute.xlu0 %47 }
  0x91   :  { %v52_v46 = vsel %vm51_vm11, %v48_v44, %v50_v43  ;;  %v53_v47 = vsel %vm51_vm11, %v50_v43, %v48_v44 }
  0x92   :  { %456 = vmatprep.subr.msk.mxu0 %vm588_vm6, %v52_v46 }
  0x93   :  { %457 = vmatpush1.msk.msra.mxu0 %vm677_vm13, %v53_v47 }
  0x94   :  { %458 = vmatmul.mubr.msk.f32.vlgmr.msra.gmra.mxu0 %vm151_vm15, %v37_v48 }
 0x154   :  { %v221_v50 = vpop.f32.mrf.mxu0 }
 0x155   :  { %v229_v54 = vmul.f32 %v221_v50, %v221_v50 }
 0x156   :  { %v223_v51 = vpop.f32.mrf.mxu0 }
 0x157   :  { %v230_v52 = vmul.f32 %v223_v51, %v223_v51  ;;  %v226_v53 = vadd.f32 %v223_v51, %v221_v50 }
 0x159   :  { %227 = vadd.xlane.f32.xlu0 %v226_v53  ;;  %v231_v55 = vadd.f32 %v230_v52, %v229_v54  ;;  %v440_v52 = vld [vmem:[%s794_s1 + $0x8] sm:$0xff] }
 0x15b   :  { %232 = vadd.xlane.f32.xlu1 %v231_v55 }
 0x16c   :  { %254 = vperm.xlu1 %485, %v441_v56  }
 0x16f   :  { %247 = vperm.xlu0 %484, %v40_v57  }
 0x1e2   :  { %v228_v58 = vpop.xlane.xlu0 %227 }
 0x1e3   :  { %v234_v59 = vmul.f32 0.00390625, %v228_v58  ;;  %v443_v58 = vld [vmem:[%s795_s2 + $0x18] sm:$0xff] }
 0x1e4   :  { %v233_v60 = vpop.xlane.xlu1 %232 }
 0x1e5   :  { %v235_v61 = vmul.f32 0.00390625, %v233_v60  ;;  %v236_v62 = vmul.f32 %v234_v59, %v234_v59  ;;  %v239_v6 = vsub.f32 %v221_v50, %v234_v59  ;;  %v240_v7 = vsub.f32 %v223_v51, %v234_v59 }
 0x1e7   :  { %v237_v63 = vsub.f32 %v235_v61, %v236_v62 }
 0x1e8   :  { %v255_v16 = vpop.permute.xlu1 %254 }
 0x1e9   :  { %v238_v2 = vmax.f32 %v237_v63, 0.0 }
 0x1ea   :  { %v248_v10 = vpop.permute.xlu0 %247 }
 0x1eb   :  { %v241_v3 = vadd.f32 1e-05, %v238_v2 }
 0x1ed   :  { %486 = vrsqrt.f32 %v241_v3 }
 0x1fa   :  { %v487_v8 = vpop.eup %486 }
 0x1fb   :  { %v243_v12 = vmul.f32 %v487_v8, %v239_v6  ;;  %v244_v13 = vmul.f32 %v487_v8, %v240_v7 }
 0x1fd   :  { %v250_v17 = vmul.f32 %v248_v10, %v243_v12  ;;  %v251_v18 = vmul.f32 %v248_v10, %v244_v13 }
 0x1ff   :  { %v257_v20 = vadd.f32 %v255_v16, %v250_v17  ;;  %v258_v21 = vadd.f32 %v255_v16, %v251_v18 }
 0x201   :  { %v259_v22 = vmax.f32 %v257_v20, 0.0  ;;  %v260_v24 = vmax.f32 %v258_v21, 0.0 }
 0x203   :  { %293 = vrot.lane.b32.xlu0 %v259_v22, %s493_s19  ;;  %317 = vrot.lane.b32.xlu1 %v259_v22, %s491_s15 }
 0x207   :  { %285 = vrot.lane.b32.xlu0 %v259_v22, %s494_s0  ;;  %319 = vrot.lane.b32.xlu1 %v260_v24, %s491_s15 }
 0x20b   :  { %277 = vrot.lane.b32.xlu0 %v259_v22, %s496_s20  ;;  %309 = vrot.lane.b32.xlu1 %v259_v22, %s490_s14 }
 0x20f   :  { %269 = vrot.lane.b32.xlu0 %v259_v22, %s497_s21  ;;  %311 = vrot.lane.b32.xlu1 %v260_v24, %s490_s14 }
 0x213   :  { %261 = vrot.lane.b32.xlu0 %v259_v22, %s498_s22  ;;  %301 = vrot.lane.b32.xlu1 %v259_v22, %s492_s18 }
 0x217   :  { %303 = vrot.lane.b32.xlu1 %v260_v24, %s492_s18 }
 0x21b   :  { %295 = vrot.lane.b32.xlu1 %v260_v24, %s493_s19 }
 0x21f   :  { %287 = vrot.lane.b32.xlu1 %v260_v24, %s494_s0 }
 0x223   :  { %279 = vrot.lane.b32.xlu1 %v260_v24, %s496_s20 }
 0x227   :  { %271 = vrot.lane.b32.xlu1 %v260_v24, %s497_s21 }
 0x22b   :  { %263 = vrot.lane.b32.xlu1 %v260_v24, %s498_s22 }
 0x275   :  { %v318_v25 = vpop.permute.xlu1 %317  ;;  %v294_v33 = vpop.permute.xlu0 %293 }
 0x279   :  { %v320_v26 = vpop.permute.xlu1 %319  ;;  %v286_v38 = vpop.permute.xlu0 %285 }
 0x27a   :  { %v322_v27 = vsel %vm142_vm2, %v320_v26, %v318_v25  ;;  %v321_v28 = vsel %vm142_vm2, %v318_v25, %v320_v26 }
 0x27b   :  { %459 = vmatprep.subr.msk.mxu1 %vm579_vm3, %v322_v27  ;;  %vm818_vm3 = vcmp.lt.s32.totalorder %v562_v4, 15 }
 0x27c   :  { %460 = vmatpush1.msk.msra.mxu1 %vm584_vm5, %v321_v28 }
 0x27d   :  { %v310_v29 = vpop.permute.xlu1 %309  ;;  %v278_v41 = vpop.permute.xlu0 %277 }
 0x281   :  { %v312_v30 = vpop.permute.xlu1 %311  ;;  %v270_v47 = vpop.permute.xlu0 %269 }
 0x282   :  { %v314_v31 = vsel %vm129_vm4, %v312_v30, %v310_v29  ;;  %v313_v32 = vsel %vm129_vm4, %v310_v29, %v312_v30  ;;  %vm819_vm4 = vmmov %vm818_vm3 }
 0x283   :  { %461 = vmatprep.subr.msk.mxu1 %vm32_vm1, %v314_v31  ;;  %vm816_vm1 = vcmp.lt.s32.totalorder %v562_v4, 1 }
 0x284   :  { %345 = vmatpush1.msra.mxu1 %v313_v32  ;;  %vm817_vm2 = vmmov %vm816_vm1 }
 0x285   :  { %v302_v34 = vpop.permute.xlu1 %301  ;;  %v262_v50 = vpop.permute.xlu0 %261 }
 0x289   :  { %v304_v35 = vpop.permute.xlu1 %303 }
 0x28a   :  { %v305_v11 = vsel %vm116_vm7, %v302_v34, %v304_v35  ;;  %v306_v37 = vsel %vm116_vm7, %v304_v35, %v302_v34 }
 0x28b   :  { %462 = vmatprep.subr.msk.mxu1 %vm607_vm8, %v306_v37 }
 0x28c   :  { %463 = vmatpush1.msk.msra.mxu1 %vm615_vm9, %v305_v11 }
 0x28d   :  { %v296_v39 = vpop.permute.xlu1 %295 }
 0x28e   :  { %v297_v5 = vsel %vm103_vm10, %v294_v33, %v296_v39  ;;  %v298_v40 = vsel %vm103_vm10, %v296_v39, %v294_v33 }
 0x28f   :  { %464 = vmatprep.subr.msk.mxu1 %vm568_vm0, %v298_v40 }
 0x290   :  { %465 = vmatpush1.msk.msra.mxu1 %vm584_vm5, %v297_v5  ;;  %vm820_vm5 = vcmp.lt.s32.totalorder %v562_v4, 16 }
 0x291   :  { %350 = vmatprep.subr.mxu1 %v260_v24  ;;  %v288_v19 = vpop.permute.xlu1 %287  ;;  %vm821_vm7 = vmmov %vm820_vm5 }
 0x292   :  { %v289_v42 = vsel %vm816_vm1, %v286_v38, %v288_v19  ;;  %v290_v43 = vsel %vm817_vm2, %v288_v19, %v286_v38  ;;  %351 = vmatpush1.msra.mxu1 %v259_v22 }
 0x293   :  { %466 = vmatprep.subr.msk.mxu1 %vm588_vm6, %v289_v42 }
 0x294   :  { %467 = vmatpush1.msk.msra.mxu1 %vm615_vm9, %v290_v43 }
 0x295   :  { %v280_v44 = vpop.permute.xlu1 %279 }
 0x296   :  { %v281_v14 = vsel %vm818_vm3, %v278_v41, %v280_v44  ;;  %v282_v46 = vsel %vm819_vm4, %v280_v44, %v278_v41 }
 0x297   :  { %468 = vmatprep.subr.msk.mxu1 %vm568_vm0, %v281_v14 }
 0x298   :  { %469 = vmatpush1.msk.msra.mxu1 %vm653_vm14, %v282_v46 }
 0x299   :  { %v272_v48 = vpop.permute.xlu1 %271 }
 0x29a   :  { %v274_v49 = vsel %vm820_vm5, %v272_v48, %v270_v47  ;;  %v273_v23 = vsel %vm821_vm7, %v270_v47, %v272_v48 }
 0x29b   :  { %356 = vmatprep.subr.mxu1 %v273_v23 }
 0x29c   :  { %470 = vmatpush1.msk.msra.mxu1 %vm21_vm12, %v274_v49 }
 0x29d   :  { %v264_v51 = vpop.permute.xlu1 %263 }
 0x29e   :  { %v265_v9 = vsel %vm51_vm11, %v262_v50, %v264_v51  ;;  %v266_v36 = vsel %vm51_vm11, %v264_v51, %v262_v50 }
 0x29f   :  { %471 = vmatprep.subr.msk.mxu1 %vm588_vm6, %v265_v9 }
 0x2a0   :  { %472 = vmatpush1.msk.msra.mxu1 %vm677_vm13, %v266_v36 }
 0x2a1   :  { %473 = vmatmul.mubr.msk.f32.vlgmr.msra.gmra.mxu1 %vm151_vm15, %v440_v52 }
 0x361   :  { %v394_v53 = vpop.f32.mrf.mxu1 }
 0x362   :  { %v402_v57 = vmul.f32 %v394_v53, %v394_v53 }
 0x363   :  { %v396_v54 = vpop.f32.mrf.mxu1 }
 0x364   :  { %v403_v55 = vmul.f32 %v396_v54, %v396_v54  ;;  %v399_v56 = vadd.f32 %v396_v54, %v394_v53 }
 0x366   :  { %400 = vadd.xlane.f32.xlu0 %v399_v56  ;;  %v404_v4 = vadd.f32 %v403_v55, %v402_v57 }
 0x368   :  { %405 = vadd.xlane.f32.xlu1 %v404_v4 }
 0x379   :  { %427 = vperm.xlu1 %485, %v443_v58  }
 0x37c   :  { %420 = vperm.xlu0 %484, %v442_v15  }
 0x3ef   :  { %v401_v45 = vpop.xlane.xlu0 %400 }
 0x3f0   :  { %v407_v59 = vmul.f32 0.00390625, %v401_v45 }
 0x3f1   :  { %v406_v60 = vpop.xlane.xlu1 %405 }
 0x3f2   :  { %v408_v61 = vmul.f32 0.00390625, %v406_v60  ;;  %v409_v62 = vmul.f32 %v407_v59, %v407_v59  ;;  %v412_v6 = vsub.f32 %v394_v53, %v407_v59  ;;  %v413_v7 = vsub.f32 %v396_v54, %v407_v59 }
 0x3f4   :  { %v410_v63 = vsub.f32 %v408_v61, %v409_v62 }
 0x3f5   :  { %v428_v18 = vpop.permute.xlu1 %427 }
 0x3f6   :  { %v411_v2 = vmax.f32 %v410_v63, 0.0 }
 0x3f7   :  { %v421_v13 = vpop.permute.xlu0 %420 }
 0x3f8   :  { %v414_v3 = vadd.f32 1e-05, %v411_v2 }
 0x3fa   :  { %488 = vrsqrt.f32 %v414_v3 }
 0x407   :  { %v489_v8 = vpop.eup %488 }
 0x408   :  { %v416_v10 = vmul.f32 %v489_v8, %v412_v6  ;;  %v417_v12 = vmul.f32 %v489_v8, %v413_v7 }
 0x40a   :  { %v423_v16 = vmul.f32 %v421_v13, %v416_v10  ;;  %v424_v17 = vmul.f32 %v421_v13, %v417_v12 }
 0x40c   :  { %v430_v20 = vadd.f32 %v428_v18, %v423_v16  ;;  %v431_v21 = vadd.f32 %v428_v18, %v424_v17 }
 0x40e   :  { %v432_v22 = vadd.f32 %v430_v20, %v523_v0  ;;  %v433_v24 = vadd.f32 %v431_v21, %v532_v1 }
 0x410   :  { %434 = vst [vmem:[%s796_s3] sm:$0xff] %v432_v22  ;;  %435 = vst [vmem:[%s796_s3 + $0x8] sm:$0xff] %v433_v24 }

</bundles_post_ra>
